<compile_context>
chip_gen: v5e
topology: v5e:2x2
jax: 0.10.0
libtpu: 0.0.40
codegen_flags: <defaults>
</compile_context>

<pallas_src>
import math

import jax
import jax.numpy as jnp
from jax import lax
from jax.experimental import pallas as pl
from jax.experimental.pallas import tpu as pltpu

IN_DIM = 256
HID_DIM = 128
OUT_DIM = 2
BN_EPS = 1e-5
SQRT_2_OVER_PI = 0.7978845608028654
GELU_C = 0.044715


def _round_up(n, m):
    return ((n + m - 1) // m) * m


def _choose_bm(B, bm):
    # Target >=4 grid steps (keeps both v7x TensorCores busy and the pipeline deep), but keep
    # each f32 x tile >= ~512 KiB (512 rows) so per-step overhead stays amortized, and never
    # exceed the (128-rounded) batch itself.
    target = _round_up(pl.cdiv(B, 4), 128)
    bm_eff = min(bm, max(512, target))
    bm_eff = min(bm_eff, _round_up(B, 128))
    return max(bm_eff, 128)


def mlp_kernel(x_ref, w1_ref, shift_ref, w2d_ref, bdiff_ref, o_ref):
    # Per-tile bf16 cast (hides under the x DMA); f32 input never takes an extra HBM pass.
    xb = x_ref[...].astype(jnp.bfloat16)
    # fc1 on the MXU: (bm, 256) bf16 @ (256, 128) bf16 -> f32 accumulation.
    # BatchNorm scale is pre-folded into w1's columns; only the shift remains.
    h = jnp.dot(xb, w1_ref[...], preferred_element_type=jnp.float32)
    h = h + shift_ref[...]                       # fused fc1 bias + BN affine shift (f32)

    # tanh-approx GELU in bf16: tanh goes to the EUP slot, the cubic stays on a half-width
    # bf16 VALU path (v6e/v7x); result is reused directly as the fc2 operand.
    hb = h.astype(jnp.bfloat16)
    u = hb * (1.0 + GELU_C * (hb * hb))          # hb + 0.044715*hb^3
    g = 0.5 * hb * (1.0 + jnp.tanh(SQRT_2_OVER_PI * u))   # bf16 (bm, 128)
    # dropout(p=0.5) -> identity at inference

    # fc2 collapsed to the logit difference d[b] = sum_k (w2[0,k]-w2[1,k]) * g[b,k],
    # computed NT-style (contract last axes, like q @ k.T) so the batch dimension lands on the
    # 128-lane axis of the result -> lane-dense (2, bm) output stores.
    d_all = lax.dot_general(
        w2d_ref[...], g,
        dimension_numbers=(((1,), (1,)), ((), ())),
        preferred_element_type=jnp.float32,
    )                                            # (16, bm); rows 1..15 are zero padding
    d = d_all[0:1, :] + bdiff_ref[0, 0]          # (1, bm), bias from SMEM scalar

    # softmax over 2 classes == sigmoid of the logit difference
    p0 = 1.0 / (1.0 + jnp.exp(-d))               # (1, bm) f32
    o_ref[0:1, :] = p0.astype(o_ref.dtype)
    o_ref[1:2, :] = (1.0 - p0).astype(o_ref.dtype)


def mlp_forward(x, params, *, bm=2048):
    """x: (B, 256) float32 (or bfloat16). Returns (B, 2) softmax probabilities (float32)."""
    assert bm % 128 == 0, "bm must be a multiple of 128 (lane width)"
    B = x.shape[0]

    w1 = params["w1"]           # (128, 256) PyTorch Linear layout (out, in)
    b1 = params["b1"]           # (128,)
    gamma = params["bn_gamma"]  # (128,)
    beta = params["bn_beta"]    # (128,)
    rmean = params["bn_mean"]   # (128,)
    rvar = params["bn_var"]     # (128,)
    w2 = params["w2"]           # (2, 128)
    b2 = params["b2"]           # (2,)

    # Fold fc1 bias + BatchNorm(eval) into per-feature (scale, shift); fold scale into w1.
    scale = gamma / jnp.sqrt(rvar + BN_EPS)                          # (128,)
    shift = (b1 - rmean) * scale + beta                              # (128,)
    w1s = (jnp.transpose(w1) * scale[None, :]).astype(jnp.bfloat16)  # (256, 128) bf16
    shift2 = shift.reshape(1, HID_DIM).astype(jnp.float32)

    # 2-class softmax == sigmoid(logit0 - logit1): single difference row, padded to 16
    # sublanes so the bf16 operand is fully packed (16 sublanes per bf16 vreg).
    w_diff = (w2[0] - w2[1]).reshape(1, HID_DIM)
    w2d = jnp.concatenate(
        [w_diff, jnp.zeros((15, HID_DIM), w_diff.dtype)], axis=0
    ).astype(jnp.bfloat16)                                           # (16, 128) bf16
    bdiff = (b2[0] - b2[1]).reshape(1, 1).astype(jnp.float32)        # (1, 1) scalar -> SMEM

    # No wrapper-side cast or pad of x: the grid ceil-divides B and Pallas masks the ragged
    # last block (out-of-bounds input rows only feed discarded output columns).
    bm_eff = _choose_bm(B, bm)
    grid = (pl.cdiv(B, bm_eff),)

    out_t = pl.pallas_call(
        mlp_kernel,
        out_shape=jax.ShapeDtypeStruct((OUT_DIM, B), jnp.float32),
        grid_spec=pltpu.PrefetchScalarGridSpec(
            num_scalar_prefetch=0,
            grid=grid,
            in_specs=[
                # x tile; add pipeline_mode=pl.Buffered(3) only if a profile shows exposed DMA.
                pl.BlockSpec((bm_eff, IN_DIM), lambda i: (i, 0)),
                pl.BlockSpec((IN_DIM, HID_DIM), lambda i: (0, 0)),   # scaled w1^T (resident)
                pl.BlockSpec((1, HID_DIM), lambda i: (0, 0)),        # shift
                pl.BlockSpec((16, HID_DIM), lambda i: (0, 0)),       # padded w_diff
                pl.BlockSpec(memory_space=pltpu.MemorySpace.SMEM),   # b_diff scalar
            ],
            out_specs=pl.BlockSpec((OUT_DIM, bm_eff), lambda i: (0, i)),  # lane-dense (2, bm)
        ),
        compiler_params=pltpu.CompilerParams(
            dimension_semantics=("parallel",),
        ),
    )(x, w1s, shift2, w2d, bdiff)

    # Tiny wrapper-side transpose back to the PyTorch (B, 2) convention.
    return jnp.transpose(out_t)


def mlp_reference(x, params):
    """Pure-JAX f32 reference matching the PyTorch module in eval mode (exact erf GELU)."""
    scale = params["bn_gamma"] / jnp.sqrt(params["bn_var"] + BN_EPS)
    shift = (params["b1"] - params["bn_mean"]) * scale + params["bn_beta"]
    h = jnp.dot(x, params["w1"].T) * scale + shift
    h = 0.5 * h * (1.0 + lax.erf(h / math.sqrt(2.0)))
    logits = jnp.dot(h, params["w2"].T) + params["b2"]
    return jax.nn.softmax(logits, axis=-1)


def init_params(key):
    k1, k2, k3, k4, k5, k6, k7 = jax.random.split(key, 7)
    w1 = jax.random.normal(k1, (HID_DIM, IN_DIM), jnp.float32) * (1.0 / math.sqrt(IN_DIM))
    b1 = jax.random.normal(k2, (HID_DIM,), jnp.float32) * 0.01
    w2 = jax.random.normal(k3, (OUT_DIM, HID_DIM), jnp.float32) * (1.0 / math.sqrt(HID_DIM))
    b2 = jax.random.normal(k4, (OUT_DIM,), jnp.float32) * 0.01
    bn_gamma = 1.0 + 0.1 * jax.random.normal(k5, (HID_DIM,), jnp.float32)
    bn_beta = 0.1 * jax.random.normal(k6, (HID_DIM,), jnp.float32)
    bn_mean = 0.1 * jax.random.normal(k7, (HID_DIM,), jnp.float32)
    bn_var = jnp.ones((HID_DIM,), jnp.float32)
    return {
        "w1": w1, "b1": b1,
        "bn_gamma": bn_gamma, "bn_beta": bn_beta,
        "bn_mean": bn_mean, "bn_var": bn_var,
        "w2": w2, "b2": b2,
    }


if __name__ == "__main__":
    key = jax.random.PRNGKey(0)
    pkey, xkey = jax.random.split(key)
    params = init_params(pkey)

    B = 200  # not a multiple of the tile -> exercises the ragged (masked) last block
    x = jax.random.normal(xkey, (B, IN_DIM), jnp.float32)

    ref = mlp_reference(x, params)

    # Small explicit tile (2-step grid, partial last block) and the default (clamped) tile.
    out_small = jax.block_until_ready(mlp_forward(x, params, bm=128))
    out_default = jax.block_until_ready(mlp_forward(x, params))

    for out in (out_small, out_default):
        assert out.shape == (B, OUT_DIM)
        assert bool(jnp.all(jnp.isfinite(out)))
        # softmax rows sum to 1
        assert bool(jnp.all(jnp.abs(jnp.sum(out, axis=-1) - 1.0) < 1e-5))
        # matches the f32 / exact-GELU reference up to bf16 matmul + tanh-GELU rounding
        assert bool(jnp.max(jnp.abs(out - ref)) < 3e-2)

    print("KERNEL_OK")
</pallas_src>

<mosaic_0001>
module attributes {stable_mosaic.version = 11 : i64} {
  func.func @mlp_kernel(%arg0: i32, %arg1: memref<128x256xf32, #tpu.memory_space<vmem>>, %arg2: memref<256x128xbf16, #tpu.memory_space<vmem>>, %arg3: memref<1x128xf32, #tpu.memory_space<vmem>>, %arg4: memref<16x128xbf16, #tpu.memory_space<vmem>>, %arg5: memref<1x1xf32, #tpu.memory_space<smem>>, %arg6: memref<2x128xf32, #tpu.memory_space<vmem>>) attributes {dimension_semantics = [#tpu.dimension_semantics<parallel>], iteration_bounds = array<i64: 2>, scalar_prefetch = 0 : i64, scratch_operands = 0 : i64, tpu.core_type = #tpu.core_type<tc>, window_params = [{transform_indices = @transform_0, window_bounds = array<i64: 128, 256>}, {pipeline_mode = #tpu.pipeline_mode<synchronous>, transform_indices = @transform_1, window_bounds = array<i64: 256, 128>}, {pipeline_mode = #tpu.pipeline_mode<synchronous>, transform_indices = @transform_2, window_bounds = array<i64: 1, 128>}, {pipeline_mode = #tpu.pipeline_mode<synchronous>, transform_indices = @transform_3, window_bounds = array<i64: 16, 128>}, {transform_indices = @transform_4, window_bounds = array<i64: 1, 1>}, {transform_indices = @transform_5, window_bounds = array<i64: 2, 128>}]} {
    %c0 = arith.constant 0 : index
    %c0_0 = arith.constant 0 : index
    %0 = vector.load %arg1[%c0, %c0_0] : memref<128x256xf32, #tpu.memory_space<vmem>>, vector<128x256xf32>
    %1 = arith.truncf %0 : vector<128x256xf32> to vector<128x256xbf16>
    %c0_1 = arith.constant 0 : index
    %c0_2 = arith.constant 0 : index
    %2 = vector.load %arg2[%c0_1, %c0_2] : memref<256x128xbf16, #tpu.memory_space<vmem>>, vector<256x128xbf16>
    %cst = arith.constant dense<0.000000e+00> : vector<128x128xf32>
    %3 = tpu.matmul %1, %2, %cst {dimension_numbers = #tpu.dot_dimension_numbers<[1], [0], [0], [1], [0, 0, 1, 1], [], []>} : vector<128x256xbf16>, vector<256x128xbf16>, vector<128x128xf32> -> vector<128x128xf32>
    %c0_3 = arith.constant 0 : index
    %c0_4 = arith.constant 0 : index
    %4 = vector.load %arg3[%c0_3, %c0_4] : memref<1x128xf32, #tpu.memory_space<vmem>>, vector<1x128xf32>
    %5 = vector.broadcast %4 : vector<1x128xf32> to vector<128x128xf32>
    %6 = arith.addf %3, %5 : vector<128x128xf32>
    %7 = arith.truncf %6 : vector<128x128xf32> to vector<128x128xbf16>
    %8 = arith.mulf %7, %7 : vector<128x128xbf16>
    %cst_5 = arith.constant 4.467770e-02 : bf16
    %9 = vector.broadcast %cst_5 : bf16 to vector<128x128xbf16>
    %10 = arith.mulf %9, %8 : vector<128x128xbf16>
    %cst_6 = arith.constant 1.000000e+00 : bf16
    %11 = vector.broadcast %cst_6 : bf16 to vector<128x128xbf16>
    %12 = arith.addf %11, %10 : vector<128x128xbf16>
    %13 = arith.mulf %7, %12 : vector<128x128xbf16>
    %cst_7 = arith.constant 5.000000e-01 : bf16
    %14 = vector.broadcast %cst_7 : bf16 to vector<128x128xbf16>
    %15 = arith.mulf %14, %7 : vector<128x128xbf16>
    %cst_8 = arith.constant 7.968750e-01 : bf16
    %16 = vector.broadcast %cst_8 : bf16 to vector<128x128xbf16>
    %17 = arith.mulf %16, %13 : vector<128x128xbf16>
    %18 = math.tanh %17 : vector<128x128xbf16>
    %cst_9 = arith.constant 1.000000e+00 : bf16
    %19 = vector.broadcast %cst_9 : bf16 to vector<128x128xbf16>
    %20 = arith.addf %19, %18 : vector<128x128xbf16>
    %21 = arith.mulf %15, %20 : vector<128x128xbf16>
    %c0_10 = arith.constant 0 : index
    %c0_11 = arith.constant 0 : index
    %22 = vector.load %arg4[%c0_10, %c0_11] : memref<16x128xbf16, #tpu.memory_space<vmem>>, vector<16x128xbf16>
    %cst_12 = arith.constant dense<0.000000e+00> : vector<16x128xf32>
    %23 = tpu.matmul %22, %21, %cst_12 {dimension_numbers = #tpu.dot_dimension_numbers<[1], [1], [0], [0], [0, 0, 1, 0], [], []>} : vector<16x128xbf16>, vector<128x128xbf16>, vector<16x128xf32> -> vector<16x128xf32>
    %24 = vector.extract_strided_slice %23 {offsets = [0, 0], sizes = [1, 128], strides = [1, 1]} : vector<16x128xf32> to vector<1x128xf32>
    %c0_13 = arith.constant 0 : index
    %c0_14 = arith.constant 0 : index
    %25 = memref.load %arg5[%c0_13, %c0_14] : memref<1x1xf32, #tpu.memory_space<smem>>
    %26 = vector.broadcast %25 : f32 to vector<1x128xf32>
    %27 = arith.addf %24, %26 : vector<1x128xf32>
    %cst_15 = arith.constant 0.000000e+00 : f32
    %28 = vector.broadcast %cst_15 : f32 to vector<1x128xf32>
    %29 = arith.subf %28, %27 : vector<1x128xf32>
    %30 = math.exp %29 : vector<1x128xf32>
    %cst_16 = arith.constant 1.000000e+00 : f32
    %31 = vector.broadcast %cst_16 : f32 to vector<1x128xf32>
    %32 = arith.addf %31, %30 : vector<1x128xf32>
    %cst_17 = arith.constant 1.000000e+00 : f32
    %33 = vector.broadcast %cst_17 : f32 to vector<1x128xf32>
    %34 = arith.divf %33, %32 : vector<1x128xf32>
    %c0_18 = arith.constant 0 : index
    %c0_19 = arith.constant 0 : index
    %35 = vector.load %arg6[%c0_18, %c0_19] : memref<2x128xf32, #tpu.memory_space<vmem>>, vector<1x128xf32>
    tpu.vector_store %arg6[%c0_18, %c0_19], %34 {strides = array<i32>} : memref<2x128xf32, #tpu.memory_space<vmem>>, vector<1x128xf32>,
    %cst_20 = arith.constant 1.000000e+00 : f32
    %36 = vector.broadcast %cst_20 : f32 to vector<1x128xf32>
    %37 = arith.subf %36, %34 : vector<1x128xf32>
    %c1 = arith.constant 1 : index
    %c0_21 = arith.constant 0 : index
    %38 = vector.load %arg6[%c1, %c0_21] : memref<2x128xf32, #tpu.memory_space<vmem>>, vector<1x128xf32>
    tpu.vector_store %arg6[%c1, %c0_21], %37 {strides = array<i32>} : memref<2x128xf32, #tpu.memory_space<vmem>>, vector<1x128xf32>,
    return
  }
  func.func @transform_0(%arg0: i32) -> (i32, i32) {
    %c0_i32 = arith.constant 0 : i32
    %c0_i32_0 = arith.constant 0 : i32
    return %arg0, %c0_i32 : i32, i32
  }
  func.func @transform_1(%arg0: i32) -> (i32, i32) {
    %c0_i32 = arith.constant 0 : i32
    %c0_i32_0 = arith.constant 0 : i32
    %c0_i32_1 = arith.constant 0 : i32
    return %c0_i32, %c0_i32_0 : i32, i32
  }
  func.func @transform_2(%arg0: i32) -> (i32, i32) {
    %c0_i32 = arith.constant 0 : i32
    %c0_i32_0 = arith.constant 0 : i32
    %c0_i32_1 = arith.constant 0 : i32
    return %c0_i32, %c0_i32_0 : i32, i32
  }
  func.func @transform_3(%arg0: i32) -> (i32, i32) {
    %c0_i32 = arith.constant 0 : i32
    %c0_i32_0 = arith.constant 0 : i32
    %c0_i32_1 = arith.constant 0 : i32
    return %c0_i32, %c0_i32_0 : i32, i32
  }
  func.func @transform_4(%arg0: i32) -> (i32, i32) {
    %c0_i32 = arith.constant 0 : i32
    %c0_i32_0 = arith.constant 0 : i32
    %c0_i32_1 = arith.constant 0 : i32
    return %c0_i32, %c0_i32_0 : i32, i32
  }
  func.func @transform_5(%arg0: i32) -> (i32, i32) {
    %c0_i32 = arith.constant 0 : i32
    %c0_i32_0 = arith.constant 0 : i32
    return %c0_i32, %arg0 : i32, i32
  }
}

</mosaic_0001>

<bundles_post_ra>
// kernel: tpu_custom_call.1
= control target key start
LH: loop header
LB: loop body
LE: loop exit
PB: predicated region body
PF: predicated region fallthrough
CT: control target
= control target key end

     0   :  { %s1967_s0 = inlined_call_operand.hbm [shape: f32[200,256], index: 0, kind: input, shape index: {}]   ;;  %s1968_s1 = inlined_call_operand.hbm [shape: bf16[256,128], index: 1, kind: input, shape index: {}]   ;;  %s1969_s2 = inlined_call_operand.vmem [shape: f32[1,128], index: 2, kind: input, shape index: {}]   ;;  %s1970_s3 = inlined_call_operand.hbm [shape: bf16[16,128], index: 3, kind: input, shape index: {}]   ;;  %s1971_s4 = inlined_call_operand.<no memory space> [shape: f32[1,1], index: 4, kind: input, shape index: {}]   ;;  %s1972_s5 = inlined_call_operand.hbm [shape: f32[2,200], index: 5, kind: output, shape index: {}]  }
   0x1   :  { %10 = sst [smem:[#allocation2]] %s1971_s4 }
   0x2   :  { %11 = vsyncpa [#allocation4], 0 }
   0x3   :  { %13 = vsyncpa [#allocation4 + $0x1], 0 }
   0x4   :  { %14 = vsyncpa [#allocation7], 0 }
   0x5   :  { %15 = vsyncpa [#allocation5], 0 }
   0x6   :  { %17 = vsyncpa [#allocation5 + $0x1], 0  ;;  %s1595_s20 = smov 0   ;;  %s1597_s21 = smov 0  }
   0x7   :  { %s1599_s22 = smov 0   ;;  %s1601_s23 = smov 0  }
   0x8 LB: > { %s1616_s4 = sadd.s32 4294967295, %s1553_s23   ;;  %s1163_s24 = sadd.s32 4294967294, %s1553_s23   ;;  %s1553_s23 = sphi %s1601_s23, %s1990_s23   ;;  %s1549_s22 = sphi %s1599_s22, %s1989_s22   ;;  %s1545_s21 = sphi %s1597_s21, %s1988_s21   ;;  %s1541_s20 = sphi %s1595_s20, %s1987_s20  }
   0x9   : > { %s1620_s25 = sadd.s32 1, %s1553_s23   ;;  %s30_s26 = sadd.s32 1, %s1549_s22 }
   0xa   : > { %s27_s27 = ssub.s32 %s1553_s23, %s1620_s25  ;;  %p37_p0 = scmp.ne.s32.totalorder %s1549_s22, %s1545_s21 }
   0xb   : > { %p28_p1 = scmp.eq.s32.totalorder %s27_s27, 0  ;;  %p38_p2 = scmp.eq.s32.totalorder %s1553_s23, 0 }
   0xc   : > { %p43_p3 = scmp.ne.s32.totalorder %s1545_s21, %s1541_s20  ;;  %p1975_p4 = scmp.eq.s32.totalorder %s1616_s4, 0 }
   0xd   : > { %s1632_s28 = scalar_select %p28_p1, %s1549_s22, %s30_s26  }
   0xe   : > { %p1634_p5 = por %p38_p2, %p37_p0  ;;  %p1640_p6 = por %p1975_p4, %p43_p3 }
   0xf   : > { %p151_p7 = scmp.eq.s32.totalorder %s1616_s4, 1  ;;  %p157_p8 = scmp.eq.s32.totalorder %s1163_s24, 1 }
  0x10   : > { %p1164_p9 = scmp.ge.s32.totalorder %s1553_s23, 1  ;;  %p164_p10 = scmp.lt.s32.totalorder %s1553_s23, 3 }
  0x11   : > { %p1647_p11 = por %p151_p7, %p37_p0  ;;  %p1651_p12 = por %p157_p8, %p43_p3 }
  0x12   : > { %p1655_p13 = pnand %p1164_p9, %p164_p10  ;;  %s175_s11 = sshll.u32 %s1968_s1, 4  ;;  %s176_s11 = int_to_ptr.hbm [resolvable:$true] %s175_s11 }
  0x13   : > { %s1979_s7 = scalar_select %p1651_p12, 1, 0 }
  0x14   : > { %p1293_p1 = pneg %p1655_p13  ;;  %s1555_s12 = smov [#allocation6]  }
  0x15   : > { %s177_s13 = sshll.u32 %s1555_s12, 4  ;;  %s192_s16 = sshll.u32 %s1970_s3, 4  ;;  %s178_s13 = int_to_ptr.vmem [resolvable:$true] %s177_s13  ;;  %s193_s16 = int_to_ptr.hbm [resolvable:$true] %s192_s16 }
  0x16   : > { %p1294_p0 = pnand %p1293_p1, %p1975_p4  ;;  %s1556_s17 = smov 64  }
  0x17   : > { %s1557_s18 = smov 4   ;;  %s1558_s19 = smov [#allocation8]  }
  0x18   : > { %1296 = dma.hbm_to_vmem [thread:$0]  (!%p1294_p0), %s176_s11, 2048, %s178_s13, [#allocation7], %s1556_s17, %s1556_s17, %s1557_s18  }
  0x19   : > { %s194_s24 = sshll.u32 %s1558_s19, 4  ;;  %p1974_p2 = scmp.ge.s32.totalorder %s1553_s23, 2  ;;  %s195_s24 = int_to_ptr.vmem [resolvable:$true] %s194_s24 }
  0x1a   : > { %1299 = dma.hbm_to_vmem [thread:$0]  (!%p1294_p0), %s193_s16, 128, %s195_s24, [#allocation7], %s1556_s17, %s1556_s17, %s1557_s18  }
  0x1b   : > { %207 = sbr.rel (%p1974_p2) target bundleno = 69 (0x45), region = 32 }
  0x20   : > { %210 = sbr.rel (!%p1634_p5) target bundleno = 69 (0x45), region = 36  ;;  %s211_s26 = sand.u32 (%p1634_p5), 1, %s1549_s22  }
  0x21   : > { %s1169_s27 = sshll.u32 (%p1634_p5), %s1553_s23, 4  ;;  %s1168_s9 = sshll.u32 (%p1634_p5), %s211_s26, 8 }
  0x22   : > { %s217_s10 = ssub.s32 (%p1634_p5), 25, %s1169_s27  ;;  %s1679_s14 = scalar_lea.sflag (%p1634_p5), [#allocation4], %s211_s26 }
  0x23   : > { %p218_p3 = scmp.lt.s32.totalorder (%p1634_p5), %s217_s10, 16  ;;  %s215_s15 = scalar_lea.vmem (%p1634_p5), [#allocation3], %s1168_s9 }
  0x25   : > { %s1992_s10 = smov (!%p218_p3, %s217_s10), 16 }
  0x26   : > { %s1254_s11 = sshll.u32 %s1992_s10, 4 }
  0x27   : > { %s222_s12 = ssub.s32 256, %s1254_s11 }
  0x28   : > { %s223_s13 = sshll.u32 %s222_s12, 4 }
  0x29   : > { %224 = vsyncadd %s1679_s14, %s223_s13  ;;  %p1682_p5 = scmp.ne.s32.totalorder %s1254_s11, 0  ;;  %s1256_s16 = sshll.u32 %s1553_s23, 8 }
  0x2a   : > { %s228_s19 = scalar_lea.hbm %s1967_s0, %s1256_s16  ;;  %s1690_s24 = sshll.u32 %s215_s15, 4  ;;  %s233_s24 = int_to_ptr.vmem [resolvable:$true] %s1690_s24 }
  0x2b   : > { %s230_s26 = sshll.u32 %s228_s19, 4  ;;  %s1973_s27 = sshll.u32 %s1992_s10, 8  ;;  %s1693_s26 = int_to_ptr.hbm [resolvable:$true] %s230_s26 }
  0x2c   : > { %s1444_s9 = sshra.s32 %s1693_s26, 4  ;;  %s1446_s11 = sshrl.u32 %s1973_s27, 4  ;;  %s1445_s9 = int_to_ptr.hbm [resolvable:$true] %s1444_s9 }
  0x2d   : > { %s1451_s12 = scalar_lea.hbm %s1445_s9, %s1446_s11  ;;  %s1455_s15 = scalar_lea.hbm %s1967_s0, 400 }
  0x2e   : > { %p1452_p7 = scmp.ne.s32.totalorder %s1445_s9, %s1451_s12  ;;  %p1456_p10 = scmp.lt.s32.totalorder %s1445_s9, %s1967_s0 }
  0x2f   : > { %p1457_p1 = scmp.lt.s32.totalorder %s1455_s15, %s1451_s12 }
  0x30   : > { %p1453_p8 = pnand %p1452_p7, %p1682_p5 }
  0x31   : > { %p1458_p0 = por %p1457_p1, %p1456_p10 }
  0x32   : > { %p1454_p9 = pneg %p1453_p8 }
  0x34   : > { %p1459_p3 = pnand %p1458_p0, %p1454_p9 }
  0x36   : > { %1462 = shalt.err (!%p1459_p3)
}
  0x37   : > { %s1463_s19 = sshra.s32 %s233_s24, 4  ;;  %s1559_s13 = smov [#allocation3]   ;;  %s1464_s19 = int_to_ptr.vmem [resolvable:$true] %s1463_s19 }
  0x38   : > { %s1470_s27 = scalar_lea.vmem %s1464_s19, %s1446_s11  ;;  %s1474_s16 = scalar_lea.vmem %s1559_s13, 512 }
  0x39   : > { %p1471_p7 = scmp.ne.s32.totalorder %s1464_s19, %s1470_s27  ;;  %p1476_p4 = scmp.lt.s32.totalorder %s1474_s16, %s1470_s27 }
  0x3b   : > { %p1472_p8 = pnand %p1471_p7, %p1682_p5 }
  0x3d   : > { %p1473_p2 = pneg %p1472_p8 }
  0x3f   : > { %p1478_p12 = pnand %p1476_p4, %p1473_p2 }
  0x41   : > { %1481 = shalt.err (!%p1478_p12)
}
  0x42   : > { %s1560_s9 = smov 256   ;;  %s1561_s12 = smov 16  }
  0x43   : > { %s1982_s15 = sshll.u32 %s1992_s10, 8 }
  0x44   : > { %238 = dma.hbm_to_vmem [thread:$0]  (%p1682_p5), %s1693_s26, %s1982_s15, %s233_s24, %s1679_s14, %s1560_s9, %s1560_s9, %s1561_s12  }
  0x45 PF: > { %244 = sbr.rel (%p1655_p13) target bundleno = 646 (0x286), region = 40  ;;  %s1722_s27 = sand.u32 (!%p1655_p13), 1, %s1545_s21  }
  0x46   : > { %s1178_s11 = sshll.u32 (!%p1655_p13), %s1722_s27, 8  ;;  %s247_s17 = scalar_lea.sflag (!%p1655_p13), [#allocation4], %s1722_s27 }
  0x47   : > { %s1726_s18 = scalar_lea.vmem (!%p1655_p13), [#allocation3], %s1178_s11 }
  0x4a   : > { %1528 = dma.done.wait (%p1640_p6), %s247_s17, 4096  }
  0x4b   : > { %1530 = vsyncadd (%p1640_p6), %s247_s17, 4294963200  ;;  %p1983_p4 = scmp.eq.s32.totalorder %s1616_s4, 0 }
  0x4d   : > { %1532 = dma.done.wait (%p1983_p4), [#allocation7], 2176   ;;  %p1984_p12 = pmov %p1983_p4 }
  0x4e   : > { %v1264_v0 = vld [vmem:[#allocation6 + $0x38] sm:$0xff]  ;;  %v1263_v2 = vld [vmem:[#allocation6 + $0x30] sm:$0xff]  ;;  %v1262_v4 = vld [vmem:[#allocation6 + $0x28] sm:$0xff]  ;;  %s1033_s10 = sld [smem:[#allocation2]]  ;;  %s1181_s14 = sshll.u32 %s1722_s27, 1 }
  0x4f   : > { %1534 = vsyncadd (%p1984_p12), [#allocation7], 4294965120  ;;  %v1272_v1 = vld [vmem:[#allocation6 + $0x78] sm:$0xff]  ;;  %474 = vmatpush.bf16.msra.mxu0 %v1264_v0  ;;  %v1271_v3 = vld [vmem:[#allocation6 + $0x70] sm:$0xff]  ;;  %1274 = vmatpush.bf16.msra.mxu3 %v1264_v0  ;;  %s1251_s29 = sshll.u32 %s1616_s4, 1  ;;  %s287_s13 = scalar_lea.vmem [#allocation9], %s1181_s14 }
  0x50   : > { %523 = vmatpush.bf16.msra.mxu1 %v1272_v1  ;;  %v1270_v5 = vld [vmem:[#allocation6 + $0x68] sm:$0xff]  ;;  %v1261_v6 = vld [vmem:[#allocation6 + $0x20] sm:$0xff]  ;;  %v1260_v8 = vld [vmem:[#allocation6 + $0x18] sm:$0xff]  ;;  %s1069_s19 = scalar_lea.hbm %s1972_s5, %s1251_s29  ;;  %s1071_s16 = sshll.u32 %s287_s13, 4  ;;  %s1072_s16 = int_to_ptr.vmem [resolvable:$true] %s1071_s16 }
  0x51   : > { %v1269_v7 = vld [vmem:[#allocation6 + $0x60] sm:$0xff]  ;;  %v1268_v9 = vld [vmem:[#allocation6 + $0x58] sm:$0xff]  ;;  %v1259_v10 = vld [vmem:[#allocation6 + $0x10] sm:$0xff]  ;;  %s1073_s9 = sshll.u32 %s1069_s19, 4  ;;  %s1059_s4 = scalar_lea.sflag [#allocation5], %s1722_s27  ;;  %s1074_s9 = int_to_ptr.hbm [resolvable:$true] %s1073_s9 }
  0x52   : > { %v1267_v11 = vld [vmem:[#allocation6 + $0x50] sm:$0xff]  ;;  %v1258_v12 = vld [vmem:[#allocation6 + $0x8] sm:$0xff]  ;;  %v1257_v14 = vld [vmem:[#allocation6] sm:$0xff]  ;;  %s1497_s12 = sshra.s32 %s1074_s9, 4  ;;  %s1498_s12 = int_to_ptr.hbm [resolvable:$true] %s1497_s12 }
  0x53   : > { %475 = vmatpush.bf16.msra.mxu0 %v1263_v2  ;;  %1275 = vmatpush.bf16.msra.mxu3 %v1263_v2  ;;  %v1266_v13 = vld [vmem:[#allocation6 + $0x48] sm:$0xff]  ;;  %v1265_v15 = vld [vmem:[#allocation6 + $0x40] sm:$0xff]  ;;  %v296_v17 = vld [vmem:[%s1726_s18 + $0x10] sm:$0xff]  ;;  %s1499_s15 = scalar_lea.hbm %s1498_s12, 2  ;;  %p1504_p5 = scmp.lt.s32.totalorder %s1498_s12, %s1972_s5 }
  0x54   : > { %524 = vmatpush.bf16.msra.mxu1 %v1271_v3  ;;  %v294_v16 = vld [vmem:[%s1726_s18] sm:$0xff]  ;;  %v295_v18 = vld [vmem:[%s1726_s18 + $0x8] sm:$0xff]  ;;  %v297_v19 = vld [vmem:[%s1726_s18 + $0x18] sm:$0xff]  ;;  %p1500_p6 = scmp.ne.s32.totalorder %s1498_s12, %s1499_s15 }
  0x55   : > { %v326_v20 = vpack.c.bf16 %v296_v17, %v294_v16  ;;  %v327_v21 = vpack.c.bf16 %v297_v19, %v295_v18  ;;  %v298_v22 = vld [vmem:[%s1726_s18 + $0x20] sm:$0xff]  ;;  %v300_v23 = vld [vmem:[%s1726_s18 + $0x30] sm:$0xff]  ;;  %v299_v24 = vld [vmem:[%s1726_s18 + $0x28] sm:$0xff] }
  0x56   : > { %v301_v25 = vld [vmem:[%s1726_s18 + $0x38] sm:$0xff]  ;;  %v328_v26 = vpack.c.bf16 %v300_v23, %v298_v22  ;;  %v302_v28 = vld [vmem:[%s1726_s18 + $0x40] sm:$0xff]  ;;  %v304_v29 = vld [vmem:[%s1726_s18 + $0x50] sm:$0xff]  ;;  %p1501_p13 = pnand %p1500_p6, %p1647_p11 }
  0x57   : > { %476 = vmatpush.bf16.msra.mxu0 %v1262_v4  ;;  %1276 = vmatpush.bf16.msra.mxu3 %v1262_v4  ;;  %v329_v27 = vpack.c.bf16 %v301_v25, %v299_v24  ;;  %v303_v30 = vld [vmem:[%s1726_s18 + $0x48] sm:$0xff]  ;;  %v305_v31 = vld [vmem:[%s1726_s18 + $0x58] sm:$0xff]  ;;  %v330_v32 = vpack.c.bf16 %v304_v29, %v302_v28  ;;  %v314_v34 = vld [vmem:[%s1726_s18 + $0xa0] sm:$0xff] }
  0x58   : > { %525 = vmatpush.bf16.msra.mxu1 %v1270_v5  ;;  %v331_v33 = vpack.c.bf16 %v305_v31, %v303_v30  ;;  %v316_v35 = vld [vmem:[%s1726_s18 + $0xb0] sm:$0xff]  ;;  %v306_v37 = vld [vmem:[%s1726_s18 + $0x60] sm:$0xff]  ;;  %v307_v39 = vld [vmem:[%s1726_s18 + $0x68] sm:$0xff]  ;;  %p1502_p2 = pneg %p1501_p13 }
  0x59   : > { %v336_v36 = vpack.c.bf16 %v316_v35, %v314_v34  ;;  %v308_v38 = vld [vmem:[%s1726_s18 + $0x70] sm:$0xff]  ;;  %v309_v40 = vld [vmem:[%s1726_s18 + $0x78] sm:$0xff]  ;;  %v318_v41 = vld [vmem:[%s1726_s18 + $0xc0] sm:$0xff] }
  0x5a   : > { %v320_v42 = vld [vmem:[%s1726_s18 + $0xd0] sm:$0xff]  ;;  %v332_v43 = vpack.c.bf16 %v308_v38, %v306_v37  ;;  %v333_v44 = vpack.c.bf16 %v309_v40, %v307_v39  ;;  %v310_v46 = vld [vmem:[%s1726_s18 + $0x80] sm:$0xff]  ;;  %v311_v48 = vld [vmem:[%s1726_s18 + $0x88] sm:$0xff] }
  0x5b   : > { %477 = vmatpush.bf16.msra.mxu0 %v1261_v6  ;;  %1277 = vmatpush.bf16.msra.mxu3 %v1261_v6  ;;  %v338_v45 = vpack.c.bf16 %v320_v42, %v318_v41  ;;  %v312_v47 = vld [vmem:[%s1726_s18 + $0x90] sm:$0xff]  ;;  %v313_v49 = vld [vmem:[%s1726_s18 + $0x98] sm:$0xff]  ;;  %v322_v50 = vld [vmem:[%s1726_s18 + $0xe0] sm:$0xff] }
  0x5c   : > { %526 = vmatpush.bf16.msra.mxu1 %v1269_v7  ;;  %v324_v51 = vld [vmem:[%s1726_s18 + $0xf0] sm:$0xff]  ;;  %v334_v52 = vpack.c.bf16 %v312_v47, %v310_v46  ;;  %v335_v53 = vpack.c.bf16 %v313_v49, %v311_v48  ;;  %v315_v55 = vld [vmem:[%s1726_s18 + $0xa8] sm:$0xff]  ;;  %v317_v56 = vld [vmem:[%s1726_s18 + $0xb8] sm:$0xff] }
  0x5d   : > { %v340_v54 = vpack.c.bf16 %v324_v51, %v322_v50  ;;  %v337_v57 = vpack.c.bf16 %v317_v56, %v315_v55  ;;  %v319_v58 = vld [vmem:[%s1726_s18 + $0xc8] sm:$0xff]  ;;  %v321_v59 = vld [vmem:[%s1726_s18 + $0xd8] sm:$0xff]  ;;  %v1771_v0 = vld [vmem:[%s1969_s2] ss:$0 sm:$0xff] }
  0x5e   : > { %v339_v60 = vpack.c.bf16 %v321_v59, %v319_v58  ;;  %v323_v61 = vld [vmem:[%s1726_s18 + $0xe8] sm:$0xff]  ;;  %v325_v62 = vld [vmem:[%s1726_s18 + $0xf8] sm:$0xff]  ;;  %s1503_s18 = scalar_lea.hbm %s1972_s5, 4 }
  0x5f   : > { %478 = vmatpush.bf16.msra.mxu0 %v1260_v8  ;;  %1278 = vmatpush.bf16.msra.mxu3 %v1260_v8  ;;  %v341_v63 = vpack.c.bf16 %v325_v62, %v323_v61  ;;  %p1505_p9 = scmp.lt.s32.totalorder %s1503_s18, %s1499_s15 }
  0x60   : > { %527 = vmatpush.bf16.msra.mxu1 %v1268_v9 }
  0x61   : > { %p1506_p10 = por %p1505_p9, %p1504_p5 }
  0x63   : > { %479 = vmatpush.bf16.msra.mxu0 %v1259_v10  ;;  %1279 = vmatpush.bf16.msra.mxu3 %v1259_v10  ;;  %p1507_p1 = pnand %p1506_p10, %p1502_p2 }
  0x64   : > { %528 = vmatpush.bf16.msra.mxu1 %v1267_v11 }
  0x67   : > { %480 = vmatpush.bf16.msra.mxu0 %v1258_v12  ;;  %1280 = vmatpush.bf16.msra.mxu3 %v1258_v12 }
  0x68   : > { %529 = vmatpush.bf16.msra.mxu1 %v1266_v13 }
  0x6b   : > { %481 = vmatpush.bf16.msra.mxu0 %v1257_v14  ;;  %1281 = vmatpush.bf16.msra.mxu3 %v1257_v14 }
  0x6c   : > { %530 = vmatpush.bf16.msra.mxu1 %v1265_v15 }
  0x6e   : > { %482 = vmatmul.bf16.vlgmr.msra.gmra.mxu0 %v326_v20  ;;  %507 = vmatmul.bf16.vlgmr.msra.gmra.mxu3 %v336_v36 }
  0x6f   : > { %531 = vmatmul.bf16.vlgmr.msra.gmra.mxu1 %v327_v21 }
  0x7e   : > { %487 = vmatmul.bf16.gmra.mxu0 %v328_v26  ;;  %512 = vmatmul.bf16.gmra.mxu3 %v338_v45 }
  0x7f   : > { %536 = vmatmul.bf16.gmra.mxu1 %v329_v27 }
  0x8e   : > { %492 = vmatmul.bf16.gmra.mxu0 %v330_v32  ;;  %517 = vmatmul.bf16.gmra.mxu3 %v340_v54 }
  0x8f   : > { %541 = vmatmul.bf16.gmra.mxu1 %v331_v33 }
  0x9e   : > { %497 = vmatmul.bf16.gmra.mxu0 %v332_v43 }
  0x9f   : > { %546 = vmatmul.bf16.gmra.mxu1 %v333_v44 }
  0xae   : > { %502 = vmatmul.bf16.gmra.mxu0 %v334_v52 }
  0xaf   : > { %551 = vmatmul.bf16.gmra.mxu1 %v335_v53 }
  0xbf   : > { %556 = vmatmul.bf16.gmra.mxu1 %v337_v57 }
  0xcf   : > { %561 = vmatmul.bf16.gmra.mxu1 %v339_v60 }
  0xdf   : > { %566 = vmatmul.bf16.gmra.mxu1 %v341_v63 }
  0xeb   : > { %v483_v1 = vpop.f32.mrf.mxu0 }
  0xec   : > { %v532_v2 = vpop.f32.mrf.mxu1  ;;  %v484_v3 = vadd.f32 %v1771_v0, %v483_v1 }
  0xee   : > { %v533_v4 = vadd.f32 %v532_v2, %v484_v3 }
  0xf0   : > { %v572_v5 = vpack.c.bf16 %v533_v4, %v533_v4 }
  0xf2   : > { %v1774_v6 = vunpack.c.l.bf16 %v572_v5 }
  0xf3   : > { %v485_v7 = vpop.f32.mrf.mxu0 }
  0xf4   : > { %v534_v8 = vpop.f32.mrf.mxu1  ;;  %v604_v9 = vmul.f32 %v1774_v6, %v1774_v6  ;;  %v486_v10 = vadd.f32 %v1771_v0, %v485_v7 }
  0xf6   : > { %v620_v11 = vpack.c.bf16 %v604_v9, %v604_v9  ;;  %v535_v12 = vadd.f32 %v534_v8, %v486_v10 }
  0xf8   : > { %v636_v13 = vunpack.c.l.bf16 %v620_v11  ;;  %v573_v14 = vpack.c.bf16 %v535_v12, %v535_v12 }
  0xfa   : > { %v652_v15 = vmul.f32 0.044677734, %v636_v13  ;;  %v1779_v16 = vunpack.c.l.bf16 %v573_v14 }
  0xfb   : > { %v488_v17 = vpop.f32.mrf.mxu0 }
  0xfc   : > { %v537_v18 = vpop.f32.mrf.mxu1  ;;  %v668_v19 = vpack.c.bf16 %v652_v15, %v652_v15  ;;  %v605_v20 = vmul.f32 %v1779_v16, %v1779_v16  ;;  %v489_v21 = vadd.f32 %v1771_v0, %v488_v17 }
  0xfe   : > { %v684_v22 = vunpack.c.l.bf16 %v668_v19  ;;  %v621_v23 = vpack.c.bf16 %v605_v20, %v605_v20  ;;  %v538_v24 = vadd.f32 %v537_v18, %v489_v21 }
 0x100   : > { %v700_v25 = vadd.f32 1.0, %v684_v22  ;;  %v637_v26 = vunpack.c.l.bf16 %v621_v23  ;;  %v574_v27 = vpack.c.bf16 %v538_v24, %v538_v24 }
 0x102   : > { %v716_v28 = vpack.c.bf16 %v700_v25, %v700_v25  ;;  %v653_v29 = vmul.f32 0.044677734, %v637_v26  ;;  %v1784_v30 = vunpack.c.l.bf16 %v574_v27 }
 0x103   : > { %v490_v31 = vpop.f32.mrf.mxu0 }
 0x104   : > { %v539_v32 = vpop.f32.mrf.mxu1  ;;  %v732_v33 = vunpack.c.l.bf16 %v716_v28  ;;  %v669_v34 = vpack.c.bf16 %v653_v29, %v653_v29  ;;  %v606_v35 = vmul.f32 %v1784_v30, %v1784_v30  ;;  %v491_v36 = vadd.f32 %v1771_v0, %v490_v31 }
 0x106   : > { %v748_v37 = vmul.f32 %v732_v33, %v1774_v6  ;;  %v685_v38 = vunpack.c.l.bf16 %v669_v34  ;;  %v622_v39 = vpack.c.bf16 %v606_v35, %v606_v35  ;;  %v540_v40 = vadd.f32 %v539_v32, %v491_v36 }
 0x108   : > { %v764_v41 = vpack.c.bf16 %v748_v37, %v748_v37  ;;  %v701_v42 = vadd.f32 1.0, %v685_v38  ;;  %v638_v43 = vunpack.c.l.bf16 %v622_v39  ;;  %v575_v44 = vpack.c.bf16 %v540_v40, %v540_v40 }
 0x10a   : > { %v812_v45 = vunpack.c.l.bf16 %v764_v41  ;;  %v717_v46 = vpack.c.bf16 %v701_v42, %v701_v42  ;;  %v654_v47 = vmul.f32 0.044677734, %v638_v43  ;;  %v1790_v48 = vunpack.c.l.bf16 %v575_v44 }
 0x10b   : > { %v493_v49 = vpop.f32.mrf.mxu0 }
 0x10c   : > { %v542_v50 = vpop.f32.mrf.mxu1  ;;  %v828_v51 = vmul.f32 0.796875, %v812_v45  ;;  %v733_v52 = vunpack.c.l.bf16 %v717_v46  ;;  %v670_v53 = vpack.c.bf16 %v654_v47, %v654_v47  ;;  %v494_v54 = vadd.f32 %v1771_v0, %v493_v49 }
 0x10d   : > { %v607_v55 = vmul.f32 %v1790_v48, %v1790_v48 }
 0x10e   : > { %v844_v56 = vpack.c.bf16 %v828_v51, %v828_v51  ;;  %v749_v57 = vmul.f32 %v733_v52, %v1779_v16  ;;  %v686_v58 = vunpack.c.l.bf16 %v670_v53  ;;  %v543_v59 = vadd.f32 %v542_v50, %v494_v54 }
 0x10f   : > { %v623_v60 = vpack.c.bf16 %v607_v55, %v607_v55  ;;  %v780_v55 = vmul.f32 0.5, %v1774_v6 }
 0x110   : > { %v860_v61 = vunpack.c.l.bf16 %v844_v56  ;;  %v765_v62 = vpack.c.bf16 %v749_v57, %v749_v57  ;;  %v702_v63 = vadd.f32 1.0, %v686_v58  ;;  %v576_v1 = vpack.c.bf16 %v543_v59, %v543_v59 }
 0x111   : > { %v639_v2 = vunpack.c.l.bf16 %v623_v60  ;;  %v781_v58 = vmul.f32 0.5, %v1779_v16  ;;  %v796_v16 = vpack.c.bf16 %v780_v55, %v780_v55 }
 0x112   : > { %1348 = vtanh.f32 %v860_v61  ;;  %v813_v3 = vunpack.c.l.bf16 %v765_v62  ;;  %v718_v4 = vpack.c.bf16 %v702_v63, %v702_v63  ;;  %v1796_v5 = vunpack.c.l.bf16 %v576_v1 }
 0x113   : > { %v655_v7 = vmul.f32 0.044677734, %v639_v2  ;;  %v495_v8 = vpop.f32.mrf.mxu0 }
 0x114   : > { %v544_v9 = vpop.f32.mrf.mxu1  ;;  %v829_v10 = vmul.f32 0.796875, %v813_v3  ;;  %v734_v11 = vunpack.c.l.bf16 %v718_v4  ;;  %v608_v12 = vmul.f32 %v1796_v5, %v1796_v5  ;;  %v496_v14 = vadd.f32 %v1771_v0, %v495_v8 }
 0x115   : > { %v671_v13 = vpack.c.bf16 %v655_v7, %v655_v7 }
 0x116   : > { %v845_v15 = vpack.c.bf16 %v829_v10, %v829_v10  ;;  %v750_v17 = vmul.f32 %v734_v11, %v1784_v30  ;;  %v624_v18 = vpack.c.bf16 %v608_v12, %v608_v12  ;;  %v545_v20 = vadd.f32 %v544_v9, %v496_v14 }
 0x117   : > { %v687_v19 = vunpack.c.l.bf16 %v671_v13  ;;  %v797_v14 = vpack.c.bf16 %v781_v58, %v781_v58 }
 0x118   : > { %v1349_v21 = vpop.eup %1348  ;;  %v861_v22 = vunpack.c.l.bf16 %v845_v15  ;;  %v766_v23 = vpack.c.bf16 %v750_v17, %v750_v17  ;;  %v640_v24 = vunpack.c.l.bf16 %v624_v18  ;;  %v577_v26 = vpack.c.bf16 %v545_v20, %v545_v20 }
 0x119   : > { %v703_v25 = vadd.f32 1.0, %v687_v19  ;;  %v892_v27 = vpack.c.bf16 %v1349_v21, %v1349_v21 }
 0x11a   : > { %1350 = vtanh.f32 %v861_v22  ;;  %v814_v28 = vunpack.c.l.bf16 %v766_v23  ;;  %v656_v29 = vmul.f32 0.044677734, %v640_v24  ;;  %v1802_v32 = vunpack.c.l.bf16 %v577_v26 }
 0x11b   : > { %v719_v31 = vpack.c.bf16 %v703_v25, %v703_v25  ;;  %v498_v33 = vpop.f32.mrf.mxu0  ;;  %v908_v38 = vunpack.c.l.bf16 %v892_v27 }
 0x11c   : > { %v547_v34 = vpop.f32.mrf.mxu1  ;;  %v830_v35 = vmul.f32 0.796875, %v814_v28  ;;  %v672_v36 = vpack.c.bf16 %v656_v29, %v656_v29  ;;  %v499_v37 = vadd.f32 %v1771_v0, %v498_v33  ;;  %v609_v40 = vmul.f32 %v1802_v32, %v1802_v32 }
 0x11d   : > { %v735_v39 = vunpack.c.l.bf16 %v719_v31  ;;  %v924_v51 = vadd.f32 1.0, %v908_v38  ;;  %v956_v29 = vunpack.c.l.bf16 %v796_v16 }
 0x11e   : > { %v846_v41 = vpack.c.bf16 %v830_v35, %v830_v35  ;;  %v688_v42 = vunpack.c.l.bf16 %v672_v36  ;;  %v548_v43 = vadd.f32 %v547_v34, %v499_v37  ;;  %v625_v45 = vpack.c.bf16 %v609_v40, %v609_v40 }
 0x11f   : > { %v751_v44 = vmul.f32 %v735_v39, %v1790_v48  ;;  %v940_v4 = vpack.c.bf16 %v924_v51, %v924_v51  ;;  %v957_v35 = vunpack.c.l.bf16 %v797_v14 }
 0x120   : > { %v1351_v46 = vpop.eup %1350  ;;  %v862_v47 = vunpack.c.l.bf16 %v846_v41  ;;  %v704_v49 = vadd.f32 1.0, %v688_v42  ;;  %v578_v50 = vpack.c.bf16 %v548_v43, %v548_v43  ;;  %v641_v53 = vunpack.c.l.bf16 %v625_v45 }
 0x121   : > { %v767_v52 = vpack.c.bf16 %v751_v44, %v751_v44  ;;  %v893_v54 = vpack.c.bf16 %v1351_v46, %v1351_v46  ;;  %v972_v21 = vunpack.c.l.bf16 %v940_v4 }
 0x122   : > { %1352 = vtanh.f32 %v862_v47  ;;  %v720_v56 = vpack.c.bf16 %v704_v49, %v704_v49  ;;  %v1809_v57 = vunpack.c.l.bf16 %v578_v50  ;;  %v657_v60 = vmul.f32 0.044677734, %v641_v53  ;;  %v1825_v47 = vpop.f32.mrf.mxu3 }
 0x123   : > { %v815_v59 = vunpack.c.l.bf16 %v767_v52  ;;  %v500_v61 = vpop.f32.mrf.mxu0  ;;  %v909_v63 = vunpack.c.l.bf16 %v893_v54  ;;  %v1820_v39 = vmul.f32 %v972_v21, %v956_v29 }
 0x124   : > { %v549_v62 = vpop.f32.mrf.mxu1  ;;  %v736_v1 = vunpack.c.l.bf16 %v720_v56  ;;  %v610_v2 = vmul.f32 %v1809_v57, %v1809_v57  ;;  %v501_v3 = vadd.f32 %v1771_v0, %v500_v61  ;;  %v673_v6 = vpack.c.bf16 %v657_v60, %v657_v60 }
 0x125   : > { %v831_v7 = vmul.f32 0.796875, %v815_v59  ;;  %v925_v8 = vadd.f32 1.0, %v909_v63  ;;  %v782_v63 = vmul.f32 0.5, %v1784_v30 }
 0x126   : > { %v752_v9 = vmul.f32 %v736_v1, %v1796_v5  ;;  %v626_v10 = vpack.c.bf16 %v610_v2, %v610_v2  ;;  %v550_v11 = vadd.f32 %v549_v62, %v501_v3  ;;  %v689_v13 = vunpack.c.l.bf16 %v673_v6 }
 0x127   : > { %v847_v12 = vpack.c.bf16 %v831_v7, %v831_v7  ;;  %v941_v15 = vpack.c.bf16 %v925_v8, %v925_v8  ;;  %v783_v1 = vmul.f32 0.5, %v1790_v48 }
 0x128   : > { %v1353_v17 = vpop.eup %1352  ;;  %v768_v18 = vpack.c.bf16 %v752_v9, %v752_v9  ;;  %v642_v19 = vunpack.c.l.bf16 %v626_v10  ;;  %v579_v20 = vpack.c.bf16 %v550_v11, %v550_v11  ;;  %v705_v23 = vadd.f32 1.0, %v689_v13 }
 0x129   : > { %v863_v22 = vunpack.c.l.bf16 %v847_v12  ;;  %v894_v24 = vpack.c.bf16 %v1353_v17, %v1353_v17  ;;  %v973_v25 = vunpack.c.l.bf16 %v941_v15 }
 0x12a   : > { %v816_v26 = vunpack.c.l.bf16 %v768_v18  ;;  %v658_v27 = vmul.f32 0.044677734, %v642_v19  ;;  %v1816_v28 = vunpack.c.l.bf16 %v579_v20  ;;  %v721_v31 = vpack.c.bf16 %v705_v23, %v705_v23 }
 0x12b   : > { %1354 = vtanh.f32 %v863_v22  ;;  %v503_v33 = vpop.f32.mrf.mxu0  ;;  %v910_v42 = vunpack.c.l.bf16 %v894_v24  ;;  %v1823_v43 = vmul.f32 %v973_v25, %v957_v35  ;;  %v798_v18 = vpack.c.bf16 %v782_v63, %v782_v63  ;;  %v510_v24 = vpop.f32.mrf.mxu3 }
 0x12c   : > { %v552_v34 = vpop.f32.mrf.mxu1  ;;  %v832_v36 = vmul.f32 0.796875, %v816_v26  ;;  %v674_v37 = vpack.c.bf16 %v658_v27, %v658_v27  ;;  %v611_v38 = vmul.f32 %v1816_v28, %v1816_v28  ;;  %v737_v40 = vunpack.c.l.bf16 %v721_v31 }
 0x12d   : > { %v504_v41 = vadd.f32 %v1771_v0, %v503_v33  ;;  %v1004_v51 = vpack.c.bf16 %v1823_v43, %v1820_v39  ;;  %v926_v59 = vadd.f32 1.0, %v910_v42  ;;  %v799_v19 = vpack.c.bf16 %v783_v1, %v783_v1 }
 0x12e   : > { %v848_v44 = vpack.c.bf16 %v832_v36, %v832_v36  ;;  %v690_v45 = vunpack.c.l.bf16 %v674_v37  ;;  %v627_v46 = vpack.c.bf16 %v611_v38, %v611_v38  ;;  %v753_v49 = vmul.f32 %v737_v40, %v1802_v32 }
 0x12f   : > { %v553_v50 = vadd.f32 %v552_v34, %v504_v41  ;;  %v942_v12 = vpack.c.bf16 %v926_v59, %v926_v59  ;;  %v958_v40 = vunpack.c.l.bf16 %v798_v18  ;;  %v959_v41 = vunpack.c.l.bf16 %v799_v19 }
 0x130   : > { %v864_v52 = vunpack.c.l.bf16 %v848_v44  ;;  %v706_v53 = vadd.f32 1.0, %v690_v45  ;;  %v643_v54 = vunpack.c.l.bf16 %v627_v46  ;;  %v769_v56 = vpack.c.bf16 %v753_v49, %v753_v49 }
 0x131   : > { %v1355_v55 = vpop.eup %1354  ;;  %v580_v58 = vpack.c.bf16 %v553_v50, %v553_v50  ;;  %v974_v31 = vunpack.c.l.bf16 %v942_v12 }
 0x132   : > { %1356 = vtanh.f32 %v864_v52  ;;  %v722_v60 = vpack.c.bf16 %v706_v53, %v706_v53  ;;  %v659_v61 = vmul.f32 0.044677734, %v643_v54  ;;  %v895_v62 = vpack.c.bf16 %v1355_v55, %v1355_v55 }
 0x133   : > { %v817_v2 = vunpack.c.l.bf16 %v769_v56  ;;  %v1832_v3 = vunpack.c.l.bf16 %v580_v58  ;;  %v505_v4 = vpop.f32.mrf.mxu0  ;;  %v1842_v50 = vmul.f32 %v974_v31, %v958_v40  ;;  %v784_v56 = vmul.f32 0.5, %v1796_v5 }
 0x134   : > { %v554_v7 = vpop.f32.mrf.mxu1  ;;  %v738_v6 = vunpack.c.l.bf16 %v722_v60  ;;  %v675_v8 = vpack.c.bf16 %v659_v61, %v659_v61  ;;  %v506_v9 = vadd.f32 %v1771_v0, %v505_v4  ;;  %v911_v10 = vunpack.c.l.bf16 %v895_v62 }
 0x135   : > { %v833_v11 = vmul.f32 0.796875, %v817_v2  ;;  %v612_v16 = vmul.f32 %v1832_v3, %v1832_v3  ;;  %v509_v62 = vadd.f32 %v1771_v0, %v1825_v47  ;;  %v785_v2 = vmul.f32 0.5, %v1802_v32 }
 0x136   : > { %v754_v13 = vmul.f32 %v738_v6, %v1809_v57  ;;  %v691_v30 = vunpack.c.l.bf16 %v675_v8  ;;  %v555_v14 = vadd.f32 %v554_v7, %v506_v9  ;;  %v927_v48 = vadd.f32 1.0, %v911_v10  ;;  %v513_v9 = vpop.f32.mrf.mxu3 }
 0x137   : > { %v849_v15 = vpack.c.bf16 %v833_v11, %v833_v11  ;;  %v628_v17 = vpack.c.bf16 %v612_v16, %v612_v16  ;;  %v511_v7 = vadd.f32 %v1771_v0, %v510_v24  ;;  %v801_v19 = vpack.c.bf16 %v785_v2, %v785_v2 }
 0x138   : > { %v1357_v20 = vpop.eup %1356  ;;  %v770_v21 = vpack.c.bf16 %v754_v13, %v754_v13  ;;  %v707_v22 = vadd.f32 1.0, %v691_v30  ;;  %v581_v23 = vpack.c.bf16 %v555_v14, %v555_v14  ;;  %v943_v25 = vpack.c.bf16 %v927_v48, %v927_v48 }
 0x139   : > { %v865_v26 = vunpack.c.l.bf16 %v849_v15  ;;  %v644_v27 = vunpack.c.l.bf16 %v628_v17  ;;  %v896_v29 = vpack.c.bf16 %v1357_v20, %v1357_v20  ;;  %v800_v15 = vpack.c.bf16 %v784_v56, %v784_v56 }
 0x13a   : > { %v818_v33 = vunpack.c.l.bf16 %v770_v21  ;;  %v723_v34 = vpack.c.bf16 %v707_v22, %v707_v22  ;;  %v1838_v35 = vunpack.c.l.bf16 %v581_v23  ;;  %v975_v36 = vunpack.c.l.bf16 %v943_v25 }
 0x13b   : > { %1358 = vtanh.f32 %v865_v26  ;;  %v660_v37 = vmul.f32 0.044677734, %v644_v27  ;;  %v912_v49 = vunpack.c.l.bf16 %v896_v29  ;;  %v514_v26 = vadd.f32 %v1771_v0, %v513_v9 }
 0x13c   : > { %v557_v38 = vpop.f32.mrf.mxu1  ;;  %v834_v42 = vmul.f32 0.796875, %v818_v33  ;;  %v739_v44 = vunpack.c.l.bf16 %v723_v34  ;;  %v613_v45 = vmul.f32 %v1838_v35, %v1838_v35  ;;  %v1844_v52 = vmul.f32 %v975_v36, %v959_v41 }
 0x13d   : > { %v676_v46 = vpack.c.bf16 %v660_v37, %v660_v37  ;;  %v928_v6 = vadd.f32 1.0, %v912_v49  ;;  %v558_v48 = vadd.f32 %v557_v38, %v509_v62  ;;  %v960_v37 = vunpack.c.l.bf16 %v800_v15 }
 0x13e   : > { %v850_v53 = vpack.c.bf16 %v834_v42, %v834_v42  ;;  %v755_v54 = vmul.f32 %v739_v44, %v1816_v28  ;;  %v629_v55 = vpack.c.bf16 %v613_v45, %v613_v45  ;;  %v1005_v59 = vpack.c.bf16 %v1844_v52, %v1842_v50  ;;  %v515_v49 = vpop.f32.mrf.mxu3 }
 0x13f   : > { %v692_v58 = vunpack.c.l.bf16 %v676_v46  ;;  %v944_v17 = vpack.c.bf16 %v928_v6, %v928_v6  ;;  %v582_v31 = vpack.c.bf16 %v558_v48, %v558_v48  ;;  %v961_v38 = vunpack.c.l.bf16 %v801_v19 }
 0x140   : > { %v866_v60 = vunpack.c.l.bf16 %v850_v53  ;;  %v771_v61 = vpack.c.bf16 %v755_v54, %v755_v54  ;;  %v645_v63 = vunpack.c.l.bf16 %v629_v55 }
 0x141   : > { %v1359_v1 = vpop.eup %1358  ;;  %v708_v4 = vadd.f32 1.0, %v692_v58  ;;  %v976_v34 = vunpack.c.l.bf16 %v944_v17  ;;  %v1858_v55 = vunpack.c.l.bf16 %v582_v31 }
 0x142   : > { %1360 = vtanh.f32 %v866_v60  ;;  %v819_v8 = vunpack.c.l.bf16 %v771_v61  ;;  %v661_v5 = vmul.f32 0.044677734, %v645_v63  ;;  %v897_v10 = vpack.c.bf16 %v1359_v1, %v1359_v1 }
 0x143   : > { %v724_v11 = vpack.c.bf16 %v708_v4, %v708_v4  ;;  %v1860_v56 = vmul.f32 %v976_v34, %v960_v37 }
 0x144   : > { %v559_v16 = vpop.f32.mrf.mxu1  ;;  %v835_v12 = vmul.f32 0.796875, %v819_v8  ;;  %v677_v13 = vpack.c.bf16 %v661_v5, %v661_v5  ;;  %v913_v14 = vunpack.c.l.bf16 %v897_v10  ;;  %v787_v5 = vmul.f32 0.5, %v1816_v28 }
 0x145   : > { %v560_v30 = vadd.f32 %v559_v16, %v511_v7  ;;  %v740_v47 = vunpack.c.l.bf16 %v724_v11  ;;  %v786_v7 = vmul.f32 0.5, %v1809_v57  ;;  %v614_v10 = vmul.f32 %v1858_v55, %v1858_v55 }
 0x146   : > { %v851_v32 = vpack.c.bf16 %v835_v12, %v835_v12  ;;  %v693_v18 = vunpack.c.l.bf16 %v677_v13  ;;  %v929_v20 = vadd.f32 1.0, %v913_v14  ;;  %v516_v12 = vadd.f32 %v1771_v0, %v515_v49 }
 0x147   : > { %v756_v21 = vmul.f32 %v740_v47, %v1832_v3  ;;  %v583_v22 = vpack.c.bf16 %v560_v30, %v560_v30  ;;  %v630_v28 = vpack.c.bf16 %v614_v10, %v614_v10 }
 0x148   : > { %v1361_v23 = vpop.eup %1360  ;;  %v867_v24 = vunpack.c.l.bf16 %v851_v32  ;;  %v709_v25 = vadd.f32 1.0, %v693_v18  ;;  %v945_v27 = vpack.c.bf16 %v929_v20, %v929_v20  ;;  %v802_v32 = vpack.c.bf16 %v786_v7, %v786_v7 }
 0x149   : > { %v772_v29 = vpack.c.bf16 %v756_v21, %v756_v21  ;;  %v898_v33 = vpack.c.bf16 %v1361_v23, %v1361_v23  ;;  %v1856_v41 = vunpack.c.l.bf16 %v583_v22  ;;  %v803_v18 = vpack.c.bf16 %v787_v5, %v787_v5  ;;  %v518_v22 = vpop.f32.mrf.mxu3 }
 0x14a   : > { %1362 = vtanh.f32 %v867_v24  ;;  %v725_v36 = vpack.c.bf16 %v709_v25, %v709_v25  ;;  %v977_v45 = vunpack.c.l.bf16 %v945_v27  ;;  %v519_v31 = vadd.f32 %v1771_v0, %v518_v22 }
 0x14b   : > { %v820_v40 = vunpack.c.l.bf16 %v772_v29  ;;  %v914_v44 = vunpack.c.l.bf16 %v898_v33  ;;  %v615_v63 = vmul.f32 %v1856_v41, %v1856_v41  ;;  %v962_v37 = vunpack.c.l.bf16 %v802_v32 }
 0x14c   : > { %v562_v42 = vpop.f32.mrf.mxu1  ;;  %v741_v46 = vunpack.c.l.bf16 %v725_v36  ;;  %v1862_v58 = vmul.f32 %v977_v45, %v961_v38  ;;  %v646_v36 = vunpack.c.l.bf16 %v630_v28  ;;  %v963_v38 = vunpack.c.l.bf16 %v803_v18 }
 0x14d   : > { %v563_v53 = vadd.f32 %v562_v42, %v514_v26  ;;  %v836_v54 = vmul.f32 0.796875, %v820_v40  ;;  %v930_v1 = vadd.f32 1.0, %v914_v44  ;;  %v631_v30 = vpack.c.bf16 %v615_v63, %v615_v63 }
 0x14e   : > { %v757_v60 = vmul.f32 %v741_v46, %v1838_v35  ;;  %v1006_v2 = vpack.c.bf16 %v1862_v58, %v1860_v56 }
 0x14f   : > { %v584_v61 = vpack.c.bf16 %v563_v53, %v563_v53  ;;  %v852_v62 = vpack.c.bf16 %v836_v54, %v836_v54  ;;  %v946_v47 = vpack.c.bf16 %v930_v1, %v930_v1  ;;  %v647_v24 = vunpack.c.l.bf16 %v631_v30 }
 0x150   : > { %v1363_v4 = vpop.eup %1362  ;;  %v773_v6 = vpack.c.bf16 %v757_v60, %v757_v60 }
 0x151   : > { %v1870_v8 = vunpack.c.l.bf16 %v584_v61  ;;  %v868_v9 = vunpack.c.l.bf16 %v852_v62  ;;  %v899_v11 = vpack.c.bf16 %v1363_v4, %v1363_v4  ;;  %v978_v26 = vunpack.c.l.bf16 %v946_v47 }
 0x152   : > { %v821_v16 = vunpack.c.l.bf16 %v773_v6  ;;  %v663_v45 = vmul.f32 0.044677734, %v647_v24  ;;  %v662_v62 = vmul.f32 0.044677734, %v646_v36 }
 0x153   : > { %v616_v13 = vmul.f32 %v1870_v8, %v1870_v8  ;;  %1364 = vtanh.f32 %v868_v9  ;;  %v915_v57 = vunpack.c.l.bf16 %v899_v11  ;;  %v1883_v53 = vmul.f32 %v978_v26, %v962_v37 }
 0x154   : > { %v564_v14 = vpop.f32.mrf.mxu1  ;;  %v837_v48 = vmul.f32 0.796875, %v821_v16  ;;  %v679_v5 = vpack.c.bf16 %v663_v45, %v663_v45  ;;  %v788_v11 = vmul.f32 0.5, %v1832_v3  ;;  %v789_v16 = vmul.f32 0.5, %v1838_v35 }
 0x155   : > { %v632_v15 = vpack.c.bf16 %v616_v13, %v616_v13  ;;  %v565_v17 = vadd.f32 %v564_v14, %v516_v12  ;;  %v931_v19 = vadd.f32 1.0, %v915_v57  ;;  %v520_v13 = vpop.f32.mrf.mxu3  ;;  %v678_v14 = vpack.c.bf16 %v662_v62, %v662_v62 }
 0x156   : > { %v853_v20 = vpack.c.bf16 %v837_v48, %v837_v48  ;;  %v521_v28 = vadd.f32 %v1771_v0, %v520_v13  ;;  %v804_v35 = vpack.c.bf16 %v788_v11, %v788_v11 }
 0x157   : > { %v648_v21 = vunpack.c.l.bf16 %v632_v15  ;;  %v585_v23 = vpack.c.bf16 %v565_v17, %v565_v17  ;;  %v947_v25 = vpack.c.bf16 %v931_v19, %v931_v19  ;;  %v695_v17 = vunpack.c.l.bf16 %v679_v5 }
 0x158   : > { %v869_v27 = vunpack.c.l.bf16 %v853_v20  ;;  %v694_v22 = vunpack.c.l.bf16 %v678_v14  ;;  %v964_v0 = vunpack.c.l.bf16 %v804_v35 }
 0x159   : > { %v664_v29 = vmul.f32 0.044677734, %v648_v21  ;;  %v1879_v33 = vunpack.c.l.bf16 %v585_v23  ;;  %v1365_v34 = vpop.eup %1364  ;;  %v979_v40 = vunpack.c.l.bf16 %v947_v25  ;;  %v805_v21 = vpack.c.bf16 %v789_v16, %v789_v16 }
 0x15a   : > { %1366 = vtanh.f32 %v869_v27  ;;  %v900_v49 = vpack.c.bf16 %v1365_v34, %v1365_v34 }
 0x15b   : > { %v680_v42 = vpack.c.bf16 %v664_v29, %v664_v29  ;;  %v617_v44 = vmul.f32 %v1879_v33, %v1879_v33  ;;  %v1885_v54 = vmul.f32 %v979_v40, %v963_v38  ;;  %v711_v29 = vadd.f32 1.0, %v695_v17 }
 0x15c   : > { %v567_v46 = vpop.f32.mrf.mxu1  ;;  %v916_v1 = vunpack.c.l.bf16 %v900_v49  ;;  %v965_v40 = vunpack.c.l.bf16 %v805_v21 }
 0x15d   : > { %v633_v60 = vpack.c.bf16 %v617_v44, %v617_v44  ;;  %v568_v61 = vadd.f32 %v567_v46, %v519_v31  ;;  %v696_v63 = vunpack.c.l.bf16 %v680_v42  ;;  %v1007_v4 = vpack.c.bf16 %v1885_v54, %v1883_v53 }
 0x15e   : > { %v932_v9 = vadd.f32 1.0, %v916_v1  ;;  %v710_v42 = vadd.f32 1.0, %v694_v22 }
 0x15f   : > { %v649_v7 = vunpack.c.l.bf16 %v633_v60  ;;  %v586_v6 = vpack.c.bf16 %v568_v61, %v568_v61  ;;  %v712_v57 = vadd.f32 1.0, %v696_v63  ;;  %v727_v61 = vpack.c.bf16 %v711_v29, %v711_v29 }
 0x160   : > { %v1367_v10 = vpop.eup %1366  ;;  %v948_v19 = vpack.c.bf16 %v932_v9, %v932_v9  ;;  %v726_v5 = vpack.c.bf16 %v710_v42, %v710_v42 }
 0x161   : > { %v665_v12 = vmul.f32 0.044677734, %v649_v7  ;;  %v1891_v30 = vunpack.c.l.bf16 %v586_v6  ;;  %v901_v47 = vpack.c.bf16 %v1367_v10, %v1367_v10  ;;  %v728_v23 = vpack.c.bf16 %v712_v57, %v712_v57 }
 0x162   : > { %v980_v36 = vunpack.c.l.bf16 %v948_v19 }
 0x163   : > { %v681_v48 = vpack.c.bf16 %v665_v12, %v665_v12  ;;  %v618_v15 = vmul.f32 %v1891_v30, %v1891_v30  ;;  %v917_v18 = vunpack.c.l.bf16 %v901_v47  ;;  %v744_v44 = vunpack.c.l.bf16 %v728_v23 }
 0x164   : > { %v569_v32 = vpop.f32.mrf.mxu1  ;;  %v1900_v63 = vmul.f32 %v980_v36, %v964_v0  ;;  %v743_v12 = vunpack.c.l.bf16 %v727_v61  ;;  %v742_v47 = vunpack.c.l.bf16 %v726_v5 }
 0x165   : > { %v697_v3 = vunpack.c.l.bf16 %v681_v48  ;;  %v634_v20 = vpack.c.bf16 %v618_v15, %v618_v15  ;;  %v570_v24 = vadd.f32 %v569_v32, %v521_v28  ;;  %v933_v25 = vadd.f32 1.0, %v917_v18 }
 0x166   : > { %v760_v9 = vmul.f32 %v744_v44, %v1870_v8  ;;  %v759_v28 = vmul.f32 %v743_v12, %v1856_v41 }
 0x167   : > { %v713_v26 = vadd.f32 1.0, %v697_v3  ;;  %v650_v27 = vunpack.c.l.bf16 %v634_v20  ;;  %v587_v31 = vpack.c.bf16 %v570_v24, %v570_v24  ;;  %v949_v34 = vpack.c.bf16 %v933_v25, %v933_v25 }
 0x168   : > { %v776_v48 = vpack.c.bf16 %v760_v9, %v760_v9  ;;  %v758_v3 = vmul.f32 %v742_v47, %v1858_v55  ;;  %v775_v22 = vpack.c.bf16 %v759_v28, %v759_v28 }
 0x169   : > { %v729_v37 = vpack.c.bf16 %v713_v26, %v713_v26  ;;  %v666_v38 = vmul.f32 0.044677734, %v650_v27  ;;  %v1896_v45 = vunpack.c.l.bf16 %v587_v31  ;;  %v981_v46 = vunpack.c.l.bf16 %v949_v34 }
 0x16a   : > { %v824_v20 = vunpack.c.l.bf16 %v776_v48  ;;  %v774_v26 = vpack.c.bf16 %v758_v3, %v758_v3  ;;  %v823_v34 = vunpack.c.l.bf16 %v775_v22 }
 0x16b   : > { %v745_v49 = vunpack.c.l.bf16 %v729_v37  ;;  %v682_v60 = vpack.c.bf16 %v666_v38, %v666_v38  ;;  %v619_v62 = vmul.f32 %v1896_v45, %v1896_v45  ;;  %v1902_v1 = vmul.f32 %v981_v46, %v965_v40 }
 0x16c   : > { %v840_v27 = vmul.f32 0.796875, %v824_v20  ;;  %v822_v0 = vunpack.c.l.bf16 %v774_v26  ;;  %v839_v46 = vmul.f32 0.796875, %v823_v34  ;;  %v795_v3 = vmul.f32 0.5, %v1896_v45 }
 0x16d   : > { %v761_v7 = vmul.f32 %v745_v49, %v1879_v33  ;;  %v698_v6 = vunpack.c.l.bf16 %v682_v60  ;;  %v635_v10 = vpack.c.bf16 %v619_v62, %v619_v62  ;;  %v1008_v11 = vpack.c.bf16 %v1902_v1, %v1900_v63 }
 0x16e   : > { %v856_v40 = vpack.c.bf16 %v840_v27, %v840_v27  ;;  %v838_v61 = vmul.f32 0.796875, %v822_v0  ;;  %v811_v27 = vpack.c.bf16 %v795_v3, %v795_v3  ;;  %v1034_v63 = vstv %s1033_s10 }
 0x16f   : > { %v714_v16 = vadd.f32 1.0, %v698_v6  ;;  %v777_v13 = vpack.c.bf16 %v761_v7, %v761_v7  ;;  %v651_v14 = vunpack.c.l.bf16 %v635_v10  ;;  %v855_v6 = vpack.c.bf16 %v839_v46, %v839_v46 }
 0x170   : > { %v872_v62 = vunpack.c.l.bf16 %v856_v40  ;;  %v854_v9 = vpack.c.bf16 %v838_v61, %v838_v61 }
 0x171   : > { %v730_v57 = vpack.c.bf16 %v714_v16, %v714_v16  ;;  %v667_v15 = vmul.f32 0.044677734, %v651_v14  ;;  %v825_v32 = vunpack.c.l.bf16 %v777_v13  ;;  %v871_v12 = vunpack.c.l.bf16 %v855_v6 }
 0x172   : > { %v870_v47 = vunpack.c.l.bf16 %v854_v9 }
 0x173   : > { %v746_v17 = vunpack.c.l.bf16 %v730_v57  ;;  %v683_v18 = vpack.c.bf16 %v667_v15, %v667_v15  ;;  %v841_v23 = vmul.f32 0.796875, %v825_v32 }
 0x175   : > { %v762_v19 = vmul.f32 %v746_v17, %v1891_v30  ;;  %v699_v35 = vunpack.c.l.bf16 %v683_v18  ;;  %v857_v36 = vpack.c.bf16 %v841_v23, %v841_v23 }
 0x177   : > { %v778_v21 = vpack.c.bf16 %v762_v19, %v762_v19  ;;  %v715_v24 = vadd.f32 1.0, %v699_v35  ;;  %v873_v49 = vunpack.c.l.bf16 %v857_v36  ;;  %v794_v19 = vmul.f32 0.5, %v1891_v30 }
 0x178   : > { %v793_v36 = vmul.f32 0.5, %v1879_v33 }
 0x179   : > { %v826_v25 = vunpack.c.l.bf16 %v778_v21  ;;  %v731_v29 = vpack.c.bf16 %v715_v24, %v715_v24  ;;  %v810_v26 = vpack.c.bf16 %v794_v19, %v794_v19 }
 0x17b   : > { %v842_v31 = vmul.f32 0.796875, %v826_v25  ;;  %v747_v37 = vunpack.c.l.bf16 %v731_v29  ;;  %v970_v40 = vunpack.c.l.bf16 %v810_v26 }
 0x17d   : > { %v858_v38 = vpack.c.bf16 %v842_v31, %v842_v31  ;;  %v763_v42 = vmul.f32 %v747_v37, %v1896_v45  ;;  %v792_v45 = vmul.f32 0.5, %v1870_v8 }
 0x17f   : > { %v874_v44 = vunpack.c.l.bf16 %v858_v38  ;;  %v779_v60 = vpack.c.bf16 %v763_v42, %v763_v42  ;;  %v971_v42 = vunpack.c.l.bf16 %v811_v27  ;;  %v808_v9 = vpack.c.bf16 %v792_v45, %v792_v45 }
 0x181   : > { %1368 = vtanh.f32 %v874_v44  ;;  %v827_v7 = vunpack.c.l.bf16 %v779_v60  ;;  %v809_v60 = vpack.c.bf16 %v793_v36, %v793_v36 }
 0x182   : > { %1370 = vtanh.f32 %v873_v49 }
 0x183   : > { %v843_v5 = vmul.f32 0.796875, %v827_v7  ;;  %1372 = vtanh.f32 %v872_v62 }
 0x185   : > { %v859_v10 = vpack.c.bf16 %v843_v5, %v843_v5 }
 0x187   : > { %v1369_v16 = vpop.eup %1368  ;;  %v875_v13 = vunpack.c.l.bf16 %v859_v10 }
 0x188   : > { %v906_v14 = vpack.c.bf16 %v1369_v16, %v1369_v16  ;;  %v1371_v57 = vpop.eup %1370  ;;  %v791_v16 = vmul.f32 0.5, %v1856_v41 }
 0x189   : > { %1374 = vtanh.f32 %v875_v13  ;;  %v1373_v15 = vpop.eup %1372  ;;  %v905_v17 = vpack.c.bf16 %v1371_v57, %v1371_v57  ;;  %v968_v57 = vunpack.c.l.bf16 %v808_v9 }
 0x18a   : > { %v922_v48 = vunpack.c.l.bf16 %v906_v14  ;;  %1376 = vtanh.f32 %v871_v12  ;;  %v904_v32 = vpack.c.bf16 %v1373_v15, %v1373_v15  ;;  %v969_v12 = vunpack.c.l.bf16 %v809_v60 }
 0x18b   : > { %1378 = vtanh.f32 %v870_v47  ;;  %v921_v35 = vunpack.c.l.bf16 %v905_v17  ;;  %v790_v14 = vmul.f32 0.5, %v1858_v55  ;;  %v807_v17 = vpack.c.bf16 %v791_v16, %v791_v16  ;;  %v1273_v55 = vld [vmem:[#allocation8] sm:$0xff] }
 0x18c   : > { %v938_v28 = vadd.f32 1.0, %v922_v48  ;;  %v920_v24 = vunpack.c.l.bf16 %v904_v32 }
 0x18d   : > { %v937_v31 = vadd.f32 1.0, %v921_v35  ;;  %v967_v3 = vunpack.c.l.bf16 %v807_v17 }
 0x18e   : > { %v954_v23 = vpack.c.bf16 %v938_v28, %v938_v28  ;;  %v936_v0 = vadd.f32 1.0, %v920_v24 }
 0x18f   : > { %v1375_v18 = vpop.eup %1374  ;;  %v953_v46 = vpack.c.bf16 %v937_v31, %v937_v31 }
 0x190   : > { %v907_v20 = vpack.c.bf16 %v1375_v18, %v1375_v18  ;;  %v1377_v21 = vpop.eup %1376  ;;  %v986_v38 = vunpack.c.l.bf16 %v954_v23  ;;  %v952_v7 = vpack.c.bf16 %v936_v0, %v936_v0  ;;  %v806_v18 = vpack.c.bf16 %v790_v14, %v790_v14 }
 0x191   : > { %v1379_v25 = vpop.eup %1378  ;;  %v903_v34 = vpack.c.bf16 %v1377_v21, %v1377_v21  ;;  %v985_v10 = vunpack.c.l.bf16 %v953_v46 }
 0x192   : > { %v923_v22 = vunpack.c.l.bf16 %v907_v20  ;;  %v902_v30 = vpack.c.bf16 %v1379_v25, %v1379_v25  ;;  %v1002_v61 = vmul.f32 %v986_v38, %v970_v40  ;;  %v984_v13 = vunpack.c.l.bf16 %v952_v7 }
 0x193   : > { %v919_v49 = vunpack.c.l.bf16 %v903_v34  ;;  %v1001_v47 = vmul.f32 %v985_v10, %v969_v12  ;;  %v966_v35 = vunpack.c.l.bf16 %v806_v18 }
 0x194   : > { %v939_v29 = vadd.f32 1.0, %v923_v22  ;;  %v918_v6 = vunpack.c.l.bf16 %v902_v30  ;;  %v1000_v15 = vmul.f32 %v984_v13, %v968_v57 }
 0x195   : > { %v935_v33 = vadd.f32 1.0, %v919_v49 }
 0x196   : > { %v955_v37 = vpack.c.bf16 %v939_v29, %v939_v29  ;;  %v934_v8 = vadd.f32 1.0, %v918_v6  ;;  %v1010_v32 = vpack.c.bf16 %v1001_v47, %v1000_v15 }
 0x197   : > { %v951_v48 = vpack.c.bf16 %v935_v33, %v935_v33 }
 0x198   : > { %v987_v44 = vunpack.c.l.bf16 %v955_v37  ;;  %v950_v28 = vpack.c.bf16 %v934_v8, %v934_v8 }
 0x199   : > { %v983_v19 = vunpack.c.l.bf16 %v951_v48 }
 0x19a   : > { %v1003_v62 = vmul.f32 %v987_v44, %v971_v42  ;;  %v982_v20 = vunpack.c.l.bf16 %v950_v28 }
 0x19b   : > { %v999_v41 = vmul.f32 %v983_v19, %v967_v3 }
 0x19c   : > { %v1011_v5 = vpack.c.bf16 %v1003_v62, %v1002_v61  ;;  %v998_v21 = vmul.f32 %v982_v20, %v966_v35 }
 0x19e   : > { %1020 = vmatpush.bf16.xpose.msra.mxu2 %v1011_v5  ;;  %v1009_v22 = vpack.c.bf16 %v999_v41, %v998_v21 }
 0x1a6   : > { %1021 = vmatpush.bf16.xpose.msra.mxu2 %v1010_v32 }
 0x1ae   : > { %1022 = vmatpush.bf16.xpose.msra.mxu2 %v1009_v22 }
 0x1b6   : > { %1023 = vmatpush.bf16.xpose.msra.mxu2 %v1008_v11 }
 0x1be   : > { %1024 = vmatpush.bf16.xpose.msra.mxu2 %v1007_v4 }
 0x1c6   : > { %1025 = vmatpush.bf16.xpose.msra.mxu2 %v1006_v2 }
 0x1ce   : > { %1026 = vmatpush.bf16.xpose.msra.mxu2 %v1005_v59 }
 0x1d6   : > { %1027 = vmatpush.bf16.xpose.msra.mxu2 %v1004_v51 }
 0x1dd   : > { %1028 = vmatmul.bf16.vlgmr.msra.gmra.mxu2 %v1273_v55 }
 0x260   : > { %v1029_v53 = vpop.f32.mrf.mxu2 }
 0x261   : > { %v1035_v54 = vadd.f32 %v1034_v63, %v1029_v53 }
 0x263   : > { %v1036_v4 = vsub.f32 0.0, %v1035_v54 }
 0x265   : > { %v1037_v1 = vmul.f32 1.442695, %v1036_v4 }
 0x267   : > { %1380 = vpow2.f32 %v1037_v1 }
 0x268   : > { %v1031_v56 = vpop.f32.mrf.mxu2 }
 0x26d   : > { %v1381_v58 = vpop.eup %1380 }
 0x26e   : > { %v1039_v2 = vadd.f32 1.0, %v1381_v58 }
 0x270   : > { %1382 = vrcp.f32 %v1039_v2  ;;  %v1051_v43 = vand.u32 2147483648, %v1039_v2  ;;  %v1049_v59 = vand.u32 2147483647, %v1039_v2  ;;  %vm1045_vm1 = vweird.f32 %v1039_v2 }
 0x272   : > { %v1052_v23 = vor.u32 1.1754944e-38, %v1051_v43  ;;  %vm1050_vm3 = vcmp.eq.f32.partialorder %v1049_v59, 8.507059e+37 }
 0x276   : > { %v1383_v50 = vpop.eup %1382 }
 0x277   : > { %v1041_v52 = vmul.f32 %v1383_v50, %v1039_v2  ;;  %vm1046_vm0 = vweird.f32 %v1383_v50 }
 0x278   : > { %vm1047_vm2 = vmor %vm1045_vm1, %vm1046_vm0 }
 0x279   : > { %v1042_v39 = vsub.f32 1.0, %v1041_v52 }
 0x27b   : > { %v1043_v51 = vmul.f32 %v1383_v50, %v1042_v39 }
 0x27d   : > { %v1044_v11 = vadd.f32 %v1383_v50, %v1043_v51 }
 0x27f   : > { %v1048_v24 = vsel %vm1047_vm2, %v1383_v50, %v1044_v11 }
 0x280   : > { %v1053_v25 = vsel %vm1050_vm3, %v1052_v23, %v1048_v24 }
 0x281   : > { %1055 = vst [vmem:[%s287_s13] sm:$0x1] %v1053_v25  ;;  %v1056_v26 = vsub.f32 1.0, %v1053_v25 }
 0x283   : > { %1057 = vst [vmem:[%s287_s13 + $0x1] sm:$0x1] %v1056_v26 }
 0x284   : > { %1510 = shalt.err (!%p1507_p1)
}
 0x285   : > { %1291 = dma.vmem_to_hbm [thread:$0]  (%p1647_p11), %s1072_s16, 32, %s1074_s9, %s1059_s4  }
 0x286 PF: > { %s1085_s27 = sand.u32 1, %s1541_s20   ;;  %p1985_p0 = scmp.ne.s32.totalorder %s1979_s7, 0 }
 0x287   : > { %p1986_p3 = scmp.ge.s32.totalorder %s1553_s23, 2  ;;  %s1086_s10 = scalar_lea.sflag [#allocation5], %s1085_s27 }
 0x289   : > { %p1301_p7 = pnand %p1986_p3, %p1985_p0 }
 0x28b   : > { %p1302_p8 = pneg %p1301_p7 }
 0x28d   : > { %1536 = dma.done.wait (%p1302_p8), %s1086_s10, 32  }
 0x28e   : > { %1538 = vsyncadd (%p1302_p8), %s1086_s10, 4294967264  ;;  %p20_p4 = scmp.ge.s32.totalorder %s1620_s25, 4   ;;  %s1987_s20 = smov %s1545_s21 }
 0x28f   : > { %s1988_s21 = smov %s1549_s22  ;;  %s1989_s22 = smov %s1632_s28 }
 0x290   : > { %s1990_s23 = smov %s1620_s25  ;;  %22 = sbr.rel (!%p20_p4) target bundleno = 8 (0x8), region = 93 }
 0x295   :  { %1092 = vsyncpa [#allocation4], 1 }
 0x296   :  { %1094 = vsyncpa [#allocation4 + $0x1], 1 }
 0x297   :  { %1095 = vsyncpa [#allocation7], 1 }
 0x298   :  { %1096 = vsyncpa [#allocation5], 1 }
 0x299   :  { %1098 = vsyncpa [#allocation5 + $0x1], 1 }

</bundles_post_ra>
